<compile_context>
chip_gen: v5e
topology: v5e:2x2
jax: 0.10.0
libtpu: 0.0.40
codegen_flags: <defaults>
</compile_context>

<pallas_src>
import functools
import math

import numpy as np
import jax
import jax.numpy as jnp
from jax.experimental import pallas as pl
from jax.experimental.pallas import tpu as pltpu

HIDDEN = 128
LANES = 128                     # lane width of the packed L3 head
OUT_LANES = 8                   # small output slab: lane0 = -0.5*maha, lane1 = value
LOG2PI = math.log(2.0 * math.pi)


def _round_up(x, m):
    return ((x + m - 1) // m) * m


def _default_split_l2():
    """Split the block-diag L2 matmul on chips with 128x128 MXUs (v2-v5)."""
    try:
        kind = jax.devices()[0].device_kind.lower()
    except Exception:
        return False
    return any(v in kind for v in ("v2", "v3", "v4", "v5"))


# --------------------------------------------------------------------------- #
# Kernel
# --------------------------------------------------------------------------- #
def _actor_critic_kernel(
    state_ref,      # (TB, state_dim)   f32
    action_ref,     # (TB, action_dim)  f32
    w1_ref,         # (state_dim, 2H)   matmul_dtype   [w1a | w1c]
    b1_ref,         # (1, 2H)           f32
    w2_ref,         # (2H, 2H)          matmul_dtype   block-diag(w2a, w2c)
    b2_ref,         # (1, 2H)           f32
    w3_ref,         # (2H, LANES)       matmul_dtype   packed heads
    b3_ref,         # (1, LANES)        f32
    nhiv_ref,       # (1, action_dim)   f32            -0.5 / var
    out_ref,        # (TB, OUT_LANES)   f32
    *,
    action_dim: int,
    split_l2: bool,
    matmul_dtype,
):
    H = HIDDEN
    A = action_dim
    cast = lambda a: a.astype(matmul_dtype)

    # ---- fused actor+critic MLP (bf16 MXU operands, f32 accumulation) ------ #
    x = cast(state_ref[...])
    h1 = jnp.dot(x, w1_ref[...], preferred_element_type=jnp.float32) + b1_ref[...]
    h1 = jnp.maximum(h1, 0.0)                                   # (TB, 2H) f32
    h1c = cast(h1)

    if split_l2:
        # v2-v5 path: two dense 128x128 matmuls, skipping the structurally-zero
        # off-diagonal blocks of the fused L2 weight.
        h2a = (jnp.dot(h1c[:, :H], w2_ref[:H, :H],
                       preferred_element_type=jnp.float32) + b2_ref[:, :H])
        h2c = (jnp.dot(h1c[:, H:], w2_ref[H:, H:],
                       preferred_element_type=jnp.float32) + b2_ref[:, H:])
        h2a = cast(jnp.maximum(h2a, 0.0))
        h2c = cast(jnp.maximum(h2c, 0.0))
        y3 = (jnp.dot(h2a, w3_ref[:H, :], preferred_element_type=jnp.float32)
              + jnp.dot(h2c, w3_ref[H:, :], preferred_element_type=jnp.float32)
              + b3_ref[...])
    else:
        # v6e/v7x path: one full-width 256-wide matmul.
        h2 = jnp.dot(h1c, w2_ref[...], preferred_element_type=jnp.float32) + b2_ref[...]
        h2 = cast(jnp.maximum(h2, 0.0))
        y3 = jnp.dot(h2, w3_ref[...], preferred_element_type=jnp.float32) + b3_ref[...]
    #                                                             y3: (TB, 128) f32

    # actor mean = ReLU(head) on lanes 0..A-1 (the module's actor ends in ReLU)
    mean = jnp.maximum(y3[:, :A], 0.0)                          # (TB, A)
    # critic value = pre-ReLU head at lane A (static lane slice, no reduce)
    value = y3[:, A:A + 1]                                      # (TB, 1)

    diff = action_ref[...] - mean                               # (TB, A)
    half_neg_maha = jnp.sum(diff * diff * nhiv_ref[...], axis=-1, keepdims=True)

    lane = jax.lax.broadcasted_iota(jnp.int32, out_ref.shape, 1)
    out_ref[...] = jnp.where(lane == 0, half_neg_maha,
                             jnp.where(lane == 1, value, 0.0))


# --------------------------------------------------------------------------- #
# Wrapper
# --------------------------------------------------------------------------- #
def _pack_params(params, state_dim, action_dim, dtype):
    """Fuse actor+critic weights into 256-wide layers + a packed 128-lane head."""
    H = HIDDEN
    f32 = jnp.float32
    zhh = jnp.zeros((H, H), f32)

    w1 = jnp.concatenate([params["w1a"], params["w1c"]], axis=1).astype(dtype)
    b1 = jnp.concatenate([params["b1a"], params["b1c"]], axis=1).astype(f32)

    w2 = jnp.concatenate(
        [jnp.concatenate([params["w2a"], zhh], axis=1),
         jnp.concatenate([zhh, params["w2c"]], axis=1)], axis=0).astype(dtype)
    b2 = jnp.concatenate([params["b2a"], params["b2c"]], axis=1).astype(f32)

    w3 = jnp.zeros((2 * H, LANES), f32)
    w3 = w3.at[:H, :action_dim].set(params["w3a"])                      # actor head
    w3 = w3.at[H:, action_dim:action_dim + 1].set(params["w3c"])        # critic head
    w3 = w3.astype(dtype)
    b3 = jnp.zeros((1, LANES), f32)
    b3 = b3.at[0, :action_dim].set(params["b3a"][0])
    b3 = b3.at[0, action_dim].set(params["b3c"][0, 0])
    return w1, b1, w2, b2, w3, b3


def actor_critic_evaluate(state, action, params, action_var, *,
                          tile_batch=2048, split_l2=None,
                          matmul_dtype=jnp.bfloat16):
    """Pallas implementation of ActorCritic.evaluate (continuous actions).

    Returns (action_logprobs[B], state_values[B,1], dist_entropy[B]).
    """
    state = state.astype(jnp.float32)
    action = action.astype(jnp.float32)
    if action.ndim == 1:                      # mirrors the action_dim==1 reshape
        action = action.reshape(-1, 1)
    action_var = jnp.asarray(action_var, jnp.float32)

    B, state_dim = state.shape
    action_dim = action.shape[-1]
    assert action_dim + 1 <= LANES, "action_dim too large for packed 128-lane head"
    if split_l2 is None:
        split_l2 = _default_split_l2()

    # Batch tile: multiple of 8; ragged last block handled by Pallas (garbage
    # rows are row-independent and their output rows are dropped -> see header).
    TB = min(_round_up(tile_batch, 8), _round_up(B, 8))
    grid = (pl.cdiv(B, TB),)

    w1, b1, w2, b2, w3, b3 = _pack_params(params, state_dim, action_dim, matmul_dtype)
    nhiv = (-0.5 / action_var).reshape(1, action_dim)            # -0.5/var, f32

    kernel = functools.partial(_actor_critic_kernel,
                               action_dim=action_dim,
                               split_l2=split_l2,
                               matmul_dtype=matmul_dtype)

    # Batch-tiled blocks stream through VMEM; weights use a constant block
    # index so they stay resident across grid steps (no re-DMA).
    batch_spec = lambda last: pl.BlockSpec((TB, last), lambda i: (i, 0))
    const_spec = lambda r, c: pl.BlockSpec((r, c), lambda i: (0, 0))

    slab = pl.pallas_call(
        kernel,
        out_shape=jax.ShapeDtypeStruct((B, OUT_LANES), jnp.float32),
        grid=grid,
        in_specs=[
            batch_spec(state_dim),                 # state  (TB, S)
            batch_spec(action_dim),                # action (TB, A)  -- narrow, no pad
            const_spec(state_dim, 2 * HIDDEN),     # w1
            const_spec(1, 2 * HIDDEN),             # b1
            const_spec(2 * HIDDEN, 2 * HIDDEN),    # w2
            const_spec(1, 2 * HIDDEN),             # b2
            const_spec(2 * HIDDEN, LANES),         # w3
            const_spec(1, LANES),                  # b3
            const_spec(1, action_dim),             # -0.5/var
        ],
        out_specs=batch_spec(OUT_LANES),
        compiler_params=pltpu.CompilerParams(
            dimension_semantics=("parallel",),
            vmem_limit_bytes=32 * 1024 * 1024),
    )(state, action, w1, b1, w2, b2, w3, b3, nhiv)

    k = float(action_dim)
    logdet = jnp.sum(jnp.log(action_var))
    logp = slab[:, 0] - 0.5 * k * LOG2PI - 0.5 * logdet
    values = slab[:, 1:2]                                        # (B, 1)
    entropy = jnp.full((B,), 0.5 * k * (1.0 + LOG2PI), jnp.float32) + 0.5 * logdet
    return logp, values, entropy


# --------------------------------------------------------------------------- #
# Init + pure-JAX reference (mirrors the PyTorch module)
# --------------------------------------------------------------------------- #
def init_params(key, state_dim, action_dim):
    """Deterministic init matching nn.Linear shapes (stored as (in, out))."""
    def linear(kk, fan_in, fan_out):
        kw, kb = jax.random.split(kk)
        bound = 1.0 / math.sqrt(fan_in)
        w = jax.random.uniform(kw, (fan_in, fan_out), jnp.float32, -bound, bound)
        b = jax.random.uniform(kb, (1, fan_out), jnp.float32, -bound, bound)
        return w, b

    ks = jax.random.split(key, 6)
    p = {}
    p["w1a"], p["b1a"] = linear(ks[0], state_dim, HIDDEN)
    p["w2a"], p["b2a"] = linear(ks[1], HIDDEN, HIDDEN)
    p["w3a"], p["b3a"] = linear(ks[2], HIDDEN, action_dim)
    p["w1c"], p["b1c"] = linear(ks[3], state_dim, HIDDEN)
    p["w2c"], p["b2c"] = linear(ks[4], HIDDEN, HIDDEN)
    p["w3c"], p["b3c"] = linear(ks[5], HIDDEN, 1)
    return p


def reference_evaluate(state, action, params, action_var,
                       matmul_dtype=jnp.float32):
    """Pure-JAX reference.  matmul_dtype=bf16 rounds matmul operands exactly
    where the kernel does (f32 accumulation), for a tight bf16 comparison."""
    rnd = lambda a: a.astype(matmul_dtype).astype(jnp.float32)
    mm = lambda x, w: jnp.dot(rnd(x), rnd(w), preferred_element_type=jnp.float32)

    h = jax.nn.relu(mm(state, params["w1a"]) + params["b1a"])
    h = jax.nn.relu(mm(h, params["w2a"]) + params["b2a"])
    mean = jax.nn.relu(mm(h, params["w3a"]) + params["b3a"])   # actor ends with ReLU
    k = mean.shape[-1]
    diff = action - mean
    maha = jnp.sum(diff * diff / action_var, axis=-1)
    logdet = jnp.sum(jnp.log(action_var))
    logp = -0.5 * (maha + k * LOG2PI + logdet)
    ent = jnp.full((state.shape[0],), 0.5 * k * (1.0 + LOG2PI)) + 0.5 * logdet

    hc = jax.nn.relu(mm(state, params["w1c"]) + params["b1c"])
    hc = jax.nn.relu(mm(hc, params["w2c"]) + params["b2c"])
    val = mm(hc, params["w3c"]) + params["b3c"]
    return logp, val, ent


def _check(outs, refs, rtol, atol):
    for got, want in zip(outs, refs):
        np.testing.assert_allclose(np.asarray(got), np.asarray(want),
                                   rtol=rtol, atol=atol)


if __name__ == "__main__":
    state_dim, action_dim = 32, 8
    action_std_init = 0.6

    key = jax.random.PRNGKey(0)
    k_params, k_s1, k_a1, k_s2, k_a2 = jax.random.split(key, 5)

    params = init_params(k_params, state_dim, action_dim)
    action_var = jnp.full((action_dim,), action_std_init * action_std_init, jnp.float32)

    # --- small batch: single tile, bf16 matmuls, auto L2 split -------------- #
    B1 = 8
    state1 = jax.random.normal(k_s1, (B1, state_dim), jnp.float32)
    action1 = jax.random.normal(k_a1, (B1, action_dim), jnp.float32)
    out1 = actor_critic_evaluate(state1, action1, params, action_var)
    jax.block_until_ready(out1)
    _check(out1,
           reference_evaluate(state1, action1, params, action_var, jnp.bfloat16),
           rtol=2e-2, atol=2e-2)

    # --- larger batch: ragged grid (200 = 3*64 + 56-pad), fused L2, bf16 ---- #
    B2 = 200
    state2 = jax.random.normal(k_s2, (B2, state_dim), jnp.float32)
    action2 = jax.random.normal(k_a2, (B2, action_dim), jnp.float32)
    out2 = actor_critic_evaluate(state2, action2, params, action_var,
                                 tile_batch=64, split_l2=False)
    jax.block_until_ready(out2)
    _check(out2,
           reference_evaluate(state2, action2, params, action_var, jnp.bfloat16),
           rtol=2e-2, atol=2e-2)

    # --- split-L2 (v5-style) path in exact f32 for a tight numerical check -- #
    out3 = actor_critic_evaluate(state2, action2, params, action_var,
                                 tile_batch=64, split_l2=True,
                                 matmul_dtype=jnp.float32)
    jax.block_until_ready(out3)
    _check(out3,
           reference_evaluate(state2, action2, params, action_var),
           rtol=1e-4, atol=1e-4)

    print("KERNEL_OK")
</pallas_src>

<mosaic_0001>
module attributes {stable_mosaic.version = 11 : i64} {
  func.func @_actor_critic_kernel(%arg0: i32, %arg1: memref<8x32xf32, #tpu.memory_space<vmem>>, %arg2: memref<8x8xf32, #tpu.memory_space<vmem>>, %arg3: memref<32x256xbf16, #tpu.memory_space<vmem>>, %arg4: memref<1x256xf32, #tpu.memory_space<vmem>>, %arg5: memref<256x256xbf16, #tpu.memory_space<vmem>>, %arg6: memref<1x256xf32, #tpu.memory_space<vmem>>, %arg7: memref<256x128xbf16, #tpu.memory_space<vmem>>, %arg8: memref<1x128xf32, #tpu.memory_space<vmem>>, %arg9: memref<1x8xf32, #tpu.memory_space<vmem>>, %arg10: memref<8x8xf32, #tpu.memory_space<vmem>>) attributes {dimension_semantics = [#tpu.dimension_semantics<parallel>], iteration_bounds = array<i64: 1>, scalar_prefetch = 0 : i64, scratch_operands = 0 : i64, tpu.core_type = #tpu.core_type<tc>, window_params = [{transform_indices = @transform_0, window_bounds = array<i64: 8, 32>}, {transform_indices = @transform_1, window_bounds = array<i64: 8, 8>}, {pipeline_mode = #tpu.pipeline_mode<synchronous>, transform_indices = @transform_2, window_bounds = array<i64: 32, 256>}, {pipeline_mode = #tpu.pipeline_mode<synchronous>, transform_indices = @transform_3, window_bounds = array<i64: 1, 256>}, {pipeline_mode = #tpu.pipeline_mode<synchronous>, transform_indices = @transform_4, window_bounds = array<i64: 256, 256>}, {pipeline_mode = #tpu.pipeline_mode<synchronous>, transform_indices = @transform_5, window_bounds = array<i64: 1, 256>}, {pipeline_mode = #tpu.pipeline_mode<synchronous>, transform_indices = @transform_6, window_bounds = array<i64: 256, 128>}, {pipeline_mode = #tpu.pipeline_mode<synchronous>, transform_indices = @transform_7, window_bounds = array<i64: 1, 128>}, {pipeline_mode = #tpu.pipeline_mode<synchronous>, transform_indices = @transform_8, window_bounds = array<i64: 1, 8>}, {transform_indices = @transform_9, window_bounds = array<i64: 8, 8>}]} {
    %c0 = arith.constant 0 : index
    %c0_0 = arith.constant 0 : index
    %0 = vector.load %arg1[%c0, %c0_0] : memref<8x32xf32, #tpu.memory_space<vmem>>, vector<8x32xf32>
    %1 = arith.truncf %0 : vector<8x32xf32> to vector<8x32xbf16>
    %c0_1 = arith.constant 0 : index
    %c0_2 = arith.constant 0 : index
    %2 = vector.load %arg3[%c0_1, %c0_2] : memref<32x256xbf16, #tpu.memory_space<vmem>>, vector<32x256xbf16>
    %cst = arith.constant dense<0.000000e+00> : vector<8x256xf32>
    %3 = tpu.matmul %1, %2, %cst {dimension_numbers = #tpu.dot_dimension_numbers<[1], [0], [0], [1], [0, 0, 1, 1], [], []>} : vector<8x32xbf16>, vector<32x256xbf16>, vector<8x256xf32> -> vector<8x256xf32>
    %c0_3 = arith.constant 0 : index
    %c0_4 = arith.constant 0 : index
    %4 = vector.load %arg4[%c0_3, %c0_4] : memref<1x256xf32, #tpu.memory_space<vmem>>, vector<1x256xf32>
    %5 = vector.broadcast %4 : vector<1x256xf32> to vector<8x256xf32>
    %6 = arith.addf %3, %5 : vector<8x256xf32>
    %cst_5 = arith.constant 0.000000e+00 : f32
    %7 = vector.broadcast %cst_5 : f32 to vector<8x256xf32>
    %8 = arith.maximumf %6, %7 : vector<8x256xf32>
    %9 = arith.truncf %8 : vector<8x256xf32> to vector<8x256xbf16>
    %c0_6 = arith.constant 0 : index
    %c0_7 = arith.constant 0 : index
    %10 = vector.load %arg5[%c0_6, %c0_7] : memref<256x256xbf16, #tpu.memory_space<vmem>>, vector<256x256xbf16>
    %cst_8 = arith.constant dense<0.000000e+00> : vector<8x256xf32>
    %11 = tpu.matmul %9, %10, %cst_8 {dimension_numbers = #tpu.dot_dimension_numbers<[1], [0], [0], [1], [0, 0, 1, 1], [], []>} : vector<8x256xbf16>, vector<256x256xbf16>, vector<8x256xf32> -> vector<8x256xf32>
    %c0_9 = arith.constant 0 : index
    %c0_10 = arith.constant 0 : index
    %12 = vector.load %arg6[%c0_9, %c0_10] : memref<1x256xf32, #tpu.memory_space<vmem>>, vector<1x256xf32>
    %13 = vector.broadcast %12 : vector<1x256xf32> to vector<8x256xf32>
    %14 = arith.addf %11, %13 : vector<8x256xf32>
    %cst_11 = arith.constant 0.000000e+00 : f32
    %15 = vector.broadcast %cst_11 : f32 to vector<8x256xf32>
    %16 = arith.maximumf %14, %15 : vector<8x256xf32>
    %17 = arith.truncf %16 : vector<8x256xf32> to vector<8x256xbf16>
    %c0_12 = arith.constant 0 : index
    %c0_13 = arith.constant 0 : index
    %18 = vector.load %arg7[%c0_12, %c0_13] : memref<256x128xbf16, #tpu.memory_space<vmem>>, vector<256x128xbf16>
    %cst_14 = arith.constant dense<0.000000e+00> : vector<8x128xf32>
    %19 = tpu.matmul %17, %18, %cst_14 {dimension_numbers = #tpu.dot_dimension_numbers<[1], [0], [0], [1], [0, 0, 1, 1], [], []>} : vector<8x256xbf16>, vector<256x128xbf16>, vector<8x128xf32> -> vector<8x128xf32>
    %c0_15 = arith.constant 0 : index
    %c0_16 = arith.constant 0 : index
    %20 = vector.load %arg8[%c0_15, %c0_16] : memref<1x128xf32, #tpu.memory_space<vmem>>, vector<1x128xf32>
    %21 = vector.broadcast %20 : vector<1x128xf32> to vector<8x128xf32>
    %22 = arith.addf %19, %21 : vector<8x128xf32>
    %23 = vector.extract_strided_slice %22 {offsets = [0, 0], sizes = [8, 8], strides = [1, 1]} : vector<8x128xf32> to vector<8x8xf32>
    %cst_17 = arith.constant 0.000000e+00 : f32
    %24 = vector.broadcast %cst_17 : f32 to vector<8x8xf32>
    %25 = arith.maximumf %23, %24 : vector<8x8xf32>
    %26 = vector.extract_strided_slice %22 {offsets = [0, 8], sizes = [8, 1], strides = [1, 1]} : vector<8x128xf32> to vector<8x1xf32>
    %c0_18 = arith.constant 0 : index
    %c0_19 = arith.constant 0 : index
    %27 = vector.load %arg2[%c0_18, %c0_19] : memref<8x8xf32, #tpu.memory_space<vmem>>, vector<8x8xf32>
    %28 = arith.subf %27, %25 : vector<8x8xf32>
    %29 = arith.mulf %28, %28 : vector<8x8xf32>
    %c0_20 = arith.constant 0 : index
    %c0_21 = arith.constant 0 : index
    %30 = vector.load %arg9[%c0_20, %c0_21] : memref<1x8xf32, #tpu.memory_space<vmem>>, vector<1x8xf32>
    %31 = vector.broadcast %30 : vector<1x8xf32> to vector<8x8xf32>
    %32 = arith.mulf %29, %31 : vector<8x8xf32>
    %cst_22 = arith.constant dense<0.000000e+00> : vector<8xf32>
    %33 = vector.multi_reduction <add>, %32, %cst_22 [1] : vector<8x8xf32> to vector<8xf32>
    %34 = vector.shape_cast %33 : vector<8xf32> to vector<8x1xf32>
    %35 = tpu.iota {dimensions = array<i32: 1>} : vector<8x8xi32>
    %c0_i32 = arith.constant 0 : i32
    %36 = vector.broadcast %c0_i32 : i32 to vector<8x8xi32>
    %37 = arith.cmpi eq, %35, %36 : vector<8x8xi32>
    %c1_i32 = arith.constant 1 : i32
    %38 = vector.broadcast %c1_i32 : i32 to vector<8x8xi32>
    %39 = arith.cmpi eq, %35, %38 : vector<8x8xi32>
    %cst_23 = arith.constant 0.000000e+00 : f32
    %40 = vector.shape_cast %26 : vector<8x1xf32> to vector<8x1xf32>
    %41 = vector.broadcast %40 : vector<8x1xf32> to vector<8x8xf32>
    %42 = vector.broadcast %cst_23 : f32 to vector<8x8xf32>
    %43 = arith.select %39, %41, %42 : vector<8x8xi1>, vector<8x8xf32>
    %44 = vector.shape_cast %34 : vector<8x1xf32> to vector<8x1xf32>
    %45 = vector.broadcast %44 : vector<8x1xf32> to vector<8x8xf32>
    %46 = arith.select %37, %45, %43 : vector<8x8xi1>, vector<8x8xf32>
    %c0_24 = arith.constant 0 : index
    %c0_25 = arith.constant 0 : index
    %47 = vector.load %arg10[%c0_24, %c0_25] : memref<8x8xf32, #tpu.memory_space<vmem>>, vector<8x8xf32>
    tpu.vector_store %arg10[%c0_24, %c0_25], %46 {strides = array<i32>} : memref<8x8xf32, #tpu.memory_space<vmem>>, vector<8x8xf32>,
    return
  }
  func.func @transform_0(%arg0: i32) -> (i32, i32) {
    %c0_i32 = arith.constant 0 : i32
    %c0_i32_0 = arith.constant 0 : i32
    return %arg0, %c0_i32 : i32, i32
  }
  func.func @transform_1(%arg0: i32) -> (i32, i32) {
    %c0_i32 = arith.constant 0 : i32
    %c0_i32_0 = arith.constant 0 : i32
    return %arg0, %c0_i32 : i32, i32
  }
  func.func @transform_2(%arg0: i32) -> (i32, i32) {
    %c0_i32 = arith.constant 0 : i32
    %c0_i32_0 = arith.constant 0 : i32
    %c0_i32_1 = arith.constant 0 : i32
    return %c0_i32, %c0_i32_0 : i32, i32
  }
  func.func @transform_3(%arg0: i32) -> (i32, i32) {
    %c0_i32 = arith.constant 0 : i32
    %c0_i32_0 = arith.constant 0 : i32
    %c0_i32_1 = arith.constant 0 : i32
    return %c0_i32, %c0_i32_0 : i32, i32
  }
  func.func @transform_4(%arg0: i32) -> (i32, i32) {
    %c0_i32 = arith.constant 0 : i32
    %c0_i32_0 = arith.constant 0 : i32
    %c0_i32_1 = arith.constant 0 : i32
    return %c0_i32, %c0_i32_0 : i32, i32
  }
  func.func @transform_5(%arg0: i32) -> (i32, i32) {
    %c0_i32 = arith.constant 0 : i32
    %c0_i32_0 = arith.constant 0 : i32
    %c0_i32_1 = arith.constant 0 : i32
    return %c0_i32, %c0_i32_0 : i32, i32
  }
  func.func @transform_6(%arg0: i32) -> (i32, i32) {
    %c0_i32 = arith.constant 0 : i32
    %c0_i32_0 = arith.constant 0 : i32
    %c0_i32_1 = arith.constant 0 : i32
    return %c0_i32, %c0_i32_0 : i32, i32
  }
  func.func @transform_7(%arg0: i32) -> (i32, i32) {
    %c0_i32 = arith.constant 0 : i32
    %c0_i32_0 = arith.constant 0 : i32
    %c0_i32_1 = arith.constant 0 : i32
    return %c0_i32, %c0_i32_0 : i32, i32
  }
  func.func @transform_8(%arg0: i32) -> (i32, i32) {
    %c0_i32 = arith.constant 0 : i32
    %c0_i32_0 = arith.constant 0 : i32
    %c0_i32_1 = arith.constant 0 : i32
    return %c0_i32, %c0_i32_0 : i32, i32
  }
  func.func @transform_9(%arg0: i32) -> (i32, i32) {
    %c0_i32 = arith.constant 0 : i32
    %c0_i32_0 = arith.constant 0 : i32
    return %arg0, %c0_i32 : i32, i32
  }
}

</mosaic_0001>

<bundles_post_ra>
// kernel: tpu_custom_call.1
= control target key start
LH: loop header
LB: loop body
LE: loop exit
PB: predicated region body
PF: predicated region fallthrough
CT: control target
= control target key end

     0   :  { %14 = vsyncpa [#allocation3], 0  ;;  %s1153_s0 = inlined_call_operand.hbm [shape: f32[8,32], index: 0, kind: input, shape index: {}]   ;;  %s1154_s1 = inlined_call_operand.hbm [shape: f32[8,8], index: 1, kind: input, shape index: {}]   ;;  %s1155_s2 = inlined_call_operand.hbm [shape: bf16[32,256], index: 2, kind: input, shape index: {}]   ;;  %s1156_s3 = inlined_call_operand.vmem [shape: f32[1,256], index: 3, kind: input, shape index: {}]   ;;  %s1157_s4 = inlined_call_operand.hbm [shape: bf16[256,256], index: 4, kind: input, shape index: {}]   ;;  %s1158_s5 = inlined_call_operand.vmem [shape: f32[1,256], index: 5, kind: input, shape index: {}]   ;;  %s1159_s6 = inlined_call_operand.hbm [shape: bf16[256,128], index: 6, kind: input, shape index: {}]   ;;  %s1160_s7 = inlined_call_operand.vmem [shape: f32[1,128], index: 7, kind: input, shape index: {}]   ;;  %s1161_s8 = inlined_call_operand.vmem [shape: f32[1,8], index: 8, kind: input, shape index: {}]   ;;  %s1162_s9 = inlined_call_operand.hbm [shape: f32[8,8], index: 9, kind: output, shape index: {}]  }
   0x1   :  { %15 = vsyncpa [#allocation6], 0 }
   0x2   :  { %16 = vsyncpa [#allocation9], 0  ;;  %s34_s11 = sshll.u32 %s1154_s1, 4  ;;  %s35_s11 = int_to_ptr.hbm [resolvable:$true] %s34_s11 }
   0x3   :  { %17 = vsyncpa [#allocation4], 0  ;;  %s1058_s12 = smov [#allocation5]   ;;  %s59_s16 = sshll.u32 %s1157_s4, 4  ;;  %s60_s16 = int_to_ptr.hbm [resolvable:$true] %s59_s16 }
   0x4   :  { %s36_s13 = sshll.u32 %s1058_s12, 4  ;;  %s1059_s17 = smov [#allocation8]   ;;  %s37_s13 = int_to_ptr.vmem [resolvable:$true] %s36_s13 }
   0x5   :  { %39 = dma.hbm_to_vmem [thread:$0]  %s35_s11, 128, %s37_s13, [#allocation6]  }
   0x6   :  { %s61_s18 = sshll.u32 %s1059_s17, 4  ;;  %s23_s21 = sshll.u32 %s1153_s0, 4  ;;  %s62_s18 = int_to_ptr.vmem [resolvable:$true] %s61_s18  ;;  %s24_s21 = int_to_ptr.hbm [resolvable:$true] %s23_s21 }
   0x7   :  { %s1060_s1 = smov 128   ;;  %s1061_s22 = smov 8  }
   0x8   :  { %67 = dma.hbm_to_vmem [thread:$0]  %s60_s16, 4096, %s62_s18, [#allocation9], %s1060_s1, %s1060_s1, %s1061_s22  }
   0x9   :  { %s44_s25 = sshll.u32 %s1155_s2, 4  ;;  %s1062_s26 = smov [#allocation2]   ;;  %s45_s25 = int_to_ptr.hbm [resolvable:$true] %s44_s25 }
   0xa   :  { %s25_s27 = sshll.u32 %s1062_s26, 4  ;;  %s1063_s4 = smov [#allocation7]   ;;  %s26_s27 = int_to_ptr.vmem [resolvable:$true] %s25_s27 }
   0xb   :  { %28 = dma.hbm_to_vmem [thread:$0]  %s24_s21, 128, %s26_s27, [#allocation3]  }
   0xc   :  { %s46_s28 = sshll.u32 %s1063_s4, 4  ;;  %s74_s0 = sshll.u32 %s1159_s6, 4  ;;  %s47_s28 = int_to_ptr.vmem [resolvable:$true] %s46_s28  ;;  %s75_s0 = int_to_ptr.hbm [resolvable:$true] %s74_s0 }
   0xd   :  { %52 = dma.hbm_to_vmem [thread:$0]  %s45_s25, 512, %s47_s28, [#allocation6], %s1060_s1, %s1060_s1, %s1061_s22  }
   0xe   :  { %s1064_s10 = smov [#allocation10]   ;;  %s1065_s12 = smov 64  }
   0xf   :  { %s76_s11 = sshll.u32 %s1064_s10, 4  ;;  %s1066_s13 = smov 4   ;;  %s77_s11 = int_to_ptr.vmem [resolvable:$true] %s76_s11 }
  0x10   :  { %82 = dma.hbm_to_vmem [thread:$0]  %s75_s0, 2048, %s77_s11, [#allocation9], %s1065_s12, %s1065_s12, %s1066_s13  }
  0x11   :  { %1050 = dma.done.wait [#allocation3], 128  }
  0x12   :  { %1051 = vsyncadd [#allocation3], 4294967168 }
  0x13   :  { %1052 = dma.done.wait [#allocation6], 640  }
  0x14   :  { %1053 = vsyncadd [#allocation6], 4294966656 }
  0x15   :  { %1054 = dma.done.wait [#allocation9], 6144  }
  0x16   :  { %1055 = vsyncadd [#allocation9], 4294961152  ;;  %v640_v0 = vld [vmem:[#allocation7 + $0x10] sm:$0xf]  ;;  %v843_v1 = vld [vmem:[#allocation7 + $0x14] sm:$0xf0] }
  0x17   :  { %v842_v2 = vld [vmem:[#allocation7 + $0x14] sm:$0xf]  ;;  %v641_v3 = vor.u32 %v843_v1, %v640_v0  ;;  %v642_v4 = vld [vmem:[#allocation7 + $0x18] sm:$0xf0]  ;;  %v632_v5 = vld [vmem:[#allocation7] sm:$0xf] }
  0x18   :  { %v841_v6 = vld [vmem:[#allocation7 + $0x4] sm:$0xf0]  ;;  %v645_v7 = vor.u32 %v842_v2, %v642_v4  ;;  %v840_v8 = vld [vmem:[#allocation7 + $0x4] sm:$0xf]  ;;  %v634_v9 = vld [vmem:[#allocation7 + $0x8] sm:$0xf0] }
  0x19   :  { %v108_v10 = vld [vmem:[#allocation2] sm:$0xff]  ;;  %vm140_vm0 = vcmask 261120   ;;  %150 = vmatpush.bf16.msra.mxu0 %v641_v3  ;;  %v633_v11 = vor.u32 %v841_v6, %v632_v5  ;;  %v859_v13 = vld [vmem:[#allocation8 + $0x74] sm:$0xf0]  ;;  %v637_v15 = vor.u32 %v840_v8, %v634_v9  ;;  %v708_v19 = vld [vmem:[#allocation8 + $0x78] sm:$0xf0] }
  0x1a   :  { %v706_v12 = vld [vmem:[#allocation8 + $0x70] sm:$0xf]  ;;  %163 = vmatpush.bf16.msra.mxu1 %v645_v7  ;;  %v875_v17 = vld [vmem:[#allocation8 + $0xf4] sm:$0xf0]  ;;  %v858_v18 = vld [vmem:[#allocation8 + $0x74] sm:$0xf]  ;;  %v109_v25 = vpack.c.bf16 %v108_v10, %v108_v10 }
  0x1b   :  { %v770_v14 = vld [vmem:[#allocation8 + $0xf0] sm:$0xf]  ;;  %v707_v16 = vor.u32 %v859_v13, %v706_v12  ;;  %v711_v21 = vor.u32 %v858_v18, %v708_v19  ;;  %v874_v22 = vld [vmem:[#allocation8 + $0xf4] sm:$0xf]  ;;  %v772_v23 = vld [vmem:[#allocation8 + $0xf8] sm:$0xf0] }
  0x1c   :  { %v771_v20 = vor.u32 %v875_v17, %v770_v14  ;;  %v698_v24 = vld [vmem:[#allocation8 + $0x60] sm:$0xf]  ;;  %v775_v26 = vor.u32 %v874_v22, %v772_v23  ;;  %v857_v27 = vld [vmem:[#allocation8 + $0x64] sm:$0xf0]  ;;  %v856_v32 = vld [vmem:[#allocation8 + $0x64] sm:$0xf] }
  0x1d   :  { %372 = vmatpush.bf16.msra.mxu2 %v707_v16  ;;  %v762_v28 = vld [vmem:[#allocation8 + $0xe0] sm:$0xf]  ;;  %v873_v29 = vld [vmem:[#allocation8 + $0xe4] sm:$0xf0]  ;;  %151 = vmatpush.bf16.msra.mxu0 %v633_v11  ;;  %v699_v30 = vor.u32 %v857_v27, %v698_v24  ;;  %v700_v33 = vld [vmem:[#allocation8 + $0x68] sm:$0xf0] }
  0x1e   :  { %385 = vmatpush.bf16.msra.mxu3 %v771_v20  ;;  %v763_v31 = vor.u32 %v873_v29, %v762_v28  ;;  %v872_v34 = vld [vmem:[#allocation8 + $0xe4] sm:$0xf]  ;;  %164 = vmatpush.bf16.msra.mxu1 %v637_v15  ;;  %v703_v35 = vor.u32 %v856_v32, %v700_v33  ;;  %v764_v36 = vld [vmem:[#allocation8 + $0xe8] sm:$0xf0]  ;;  %v690_v37 = vld [vmem:[#allocation8 + $0x50] sm:$0xf] }
  0x1f   :  { %v855_v38 = vld [vmem:[#allocation8 + $0x54] sm:$0xf0]  ;;  %v767_v39 = vor.u32 %v872_v34, %v764_v36  ;;  %v754_v40 = vld [vmem:[#allocation8 + $0xd0] sm:$0xf]  ;;  %v854_v42 = vld [vmem:[#allocation8 + $0x54] sm:$0xf] }
  0x20   :  { %v871_v41 = vld [vmem:[#allocation8 + $0xd4] sm:$0xf0]  ;;  %646 = vmatmul.msk.bf16.vlgmr.msra.gmra.mxu0 %vm140_vm0, %v109_v25  ;;  %v691_v43 = vor.u32 %v855_v38, %v690_v37  ;;  %v692_v44 = vld [vmem:[#allocation8 + $0x58] sm:$0xf0]  ;;  %v870_v45 = vld [vmem:[#allocation8 + $0xd4] sm:$0xf] }
  0x21   :  { %398 = vmatpush.bf16.msrb.mxu0 %v711_v21  ;;  %373 = vmatpush.bf16.msra.mxu2 %v699_v30  ;;  %v756_v46 = vld [vmem:[#allocation8 + $0xd8] sm:$0xf0]  ;;  %v755_v47 = vor.u32 %v871_v41, %v754_v40  ;;  %v682_v48 = vld [vmem:[#allocation8 + $0x40] sm:$0xf]  ;;  %v853_v49 = vld [vmem:[#allocation8 + $0x44] sm:$0xf0]  ;;  %v695_v50 = vor.u32 %v854_v42, %v692_v44 }
  0x22   :  { %411 = vmatpush.bf16.msrb.mxu1 %v775_v26  ;;  %386 = vmatpush.bf16.msra.mxu3 %v763_v31  ;;  %v746_v51 = vld [vmem:[#allocation8 + $0xc0] sm:$0xf]  ;;  %v869_v52 = vld [vmem:[#allocation8 + $0xc4] sm:$0xf0]  ;;  %v759_v53 = vor.u32 %v870_v45, %v756_v46  ;;  %v852_v54 = vld [vmem:[#allocation8 + $0x44] sm:$0xf]  ;;  %v683_v56 = vor.u32 %v853_v49, %v682_v48 }
  0x23   :  { %647 = vmatmul.msk.bf16.vlgmr.msra.gmra.mxu1 %vm140_vm0, %v109_v25  ;;  %v684_v55 = vld [vmem:[#allocation8 + $0x48] sm:$0xf0]  ;;  %v868_v57 = vld [vmem:[#allocation8 + $0xc4] sm:$0xf]  ;;  %v747_v59 = vor.u32 %v869_v52, %v746_v51  ;;  %v674_v60 = vld [vmem:[#allocation8 + $0x30] sm:$0xf] }
  0x24   :  { %v748_v58 = vld [vmem:[#allocation8 + $0xc8] sm:$0xf0]  ;;  %v851_v61 = vld [vmem:[#allocation8 + $0x34] sm:$0xf0]  ;;  %v687_v62 = vor.u32 %v852_v54, %v684_v55  ;;  %v738_v63 = vld [vmem:[#allocation8 + $0xb0] sm:$0xf] }
  0x25   :  { %399 = vmatpush.bf16.msrb.mxu0 %v703_v35  ;;  %374 = vmatpush.bf16.msra.mxu2 %v691_v43  ;;  %v867_v0 = vld [vmem:[#allocation8 + $0xb4] sm:$0xf0]  ;;  %v751_v1 = vor.u32 %v868_v57, %v748_v58  ;;  %v850_v2 = vld [vmem:[#allocation8 + $0x34] sm:$0xf]  ;;  %v676_v3 = vld [vmem:[#allocation8 + $0x38] sm:$0xf0]  ;;  %v675_v4 = vor.u32 %v851_v61, %v674_v60 }
  0x26   :  { %412 = vmatpush.bf16.msrb.mxu1 %v767_v39  ;;  %387 = vmatpush.bf16.msra.mxu3 %v755_v47  ;;  %v866_v5 = vld [vmem:[#allocation8 + $0xb4] sm:$0xf]  ;;  %v740_v6 = vld [vmem:[#allocation8 + $0xb8] sm:$0xf0]  ;;  %v666_v7 = vld [vmem:[#allocation8 + $0x20] sm:$0xf]  ;;  %v739_v8 = vor.u32 %v867_v0, %v738_v63  ;;  %v679_v10 = vor.u32 %v850_v2, %v676_v3 }
  0x27   :  { %v849_v9 = vld [vmem:[#allocation8 + $0x24] sm:$0xf0]  ;;  %v730_v11 = vld [vmem:[#allocation8 + $0xa0] sm:$0xf]  ;;  %v743_v13 = vor.u32 %v866_v5, %v740_v6  ;;  %v848_v14 = vld [vmem:[#allocation8 + $0x24] sm:$0xf] }
  0x28   :  { %v865_v12 = vld [vmem:[#allocation8 + $0xa4] sm:$0xf0]  ;;  %v668_v15 = vld [vmem:[#allocation8 + $0x28] sm:$0xf0]  ;;  %v667_v16 = vor.u32 %v849_v9, %v666_v7  ;;  %v864_v17 = vld [vmem:[#allocation8 + $0xa4] sm:$0xf] }
  0x29   :  { %400 = vmatpush.bf16.msrb.mxu0 %v695_v50  ;;  %375 = vmatpush.bf16.msra.mxu2 %v683_v56  ;;  %v732_v18 = vld [vmem:[#allocation8 + $0xa8] sm:$0xf0]  ;;  %v731_v19 = vor.u32 %v865_v12, %v730_v11  ;;  %v671_v20 = vor.u32 %v848_v14, %v668_v15  ;;  %v658_v22 = vld [vmem:[#allocation8 + $0x10] sm:$0xf]  ;;  %v847_v23 = vld [vmem:[#allocation8 + $0x14] sm:$0xf0] }
  0x2a   :  { %413 = vmatpush.bf16.msrb.mxu1 %v759_v53  ;;  %388 = vmatpush.bf16.msra.mxu3 %v747_v59  ;;  %v735_v21 = vor.u32 %v864_v17, %v732_v18  ;;  %v722_v24 = vld [vmem:[#allocation8 + $0x90] sm:$0xf]  ;;  %v659_v25 = vor.u32 %v847_v23, %v658_v22  ;;  %v863_v26 = vld [vmem:[#allocation8 + $0x94] sm:$0xf0]  ;;  %v846_v27 = vld [vmem:[#allocation8 + $0x14] sm:$0xf] }
  0x2b   :  { %v660_v28 = vld [vmem:[#allocation8 + $0x18] sm:$0xf0]  ;;  %v723_v29 = vor.u32 %v863_v26, %v722_v24  ;;  %v862_v31 = vld [vmem:[#allocation8 + $0x94] sm:$0xf]  ;;  %v650_v34 = vld [vmem:[#allocation8] sm:$0xf] }
  0x2c   :  { %v663_v30 = vor.u32 %v846_v27, %v660_v28  ;;  %v724_v32 = vld [vmem:[#allocation8 + $0x98] sm:$0xf0]  ;;  %v845_v35 = vld [vmem:[#allocation8 + $0x4] sm:$0xf0]  ;;  %v714_v36 = vld [vmem:[#allocation8 + $0x80] sm:$0xf] }
  0x2d   :  { %401 = vmatpush.bf16.msrb.mxu0 %v687_v62  ;;  %376 = vmatpush.bf16.msra.mxu2 %v675_v4  ;;  %v727_v33 = vor.u32 %v862_v31, %v724_v32  ;;  %v651_v37 = vor.u32 %v845_v35, %v650_v34  ;;  %v861_v38 = vld [vmem:[#allocation8 + $0x84] sm:$0xf0]  ;;  %v844_v39 = vld [vmem:[#allocation8 + $0x4] sm:$0xf]  ;;  %v652_v40 = vld [vmem:[#allocation8 + $0x8] sm:$0xf0] }
  0x2e   :  { %414 = vmatpush.bf16.msrb.mxu1 %v751_v1  ;;  %389 = vmatpush.bf16.msra.mxu3 %v739_v8  ;;  %v715_v41 = vor.u32 %v861_v38, %v714_v36  ;;  %v655_v42 = vor.u32 %v844_v39, %v652_v40  ;;  %v860_v43 = vld [vmem:[#allocation8 + $0x84] sm:$0xf]  ;;  %v716_v44 = vld [vmem:[#allocation8 + $0x88] sm:$0xf0]  ;;  %v891_v46 = vld [vmem:[#allocation10 + $0x78] sm:$0xff]  ;;  %vm595_vm1 = vcmask 64512  }
  0x2f   :  { %v719_v45 = vor.u32 %v860_v43, %v716_v44  ;;  %v883_v47 = vld [vmem:[#allocation10 + $0x38] sm:$0xff]  ;;  %v890_v48 = vld [vmem:[#allocation10 + $0x70] sm:$0xff]  ;;  %v889_v50 = vld [vmem:[#allocation10 + $0x68] sm:$0xff]  ;;  %s618_s21 = sshll.u32 %s1162_s9, 4  ;;  %s619_s21 = int_to_ptr.hbm [resolvable:$true] %s618_s21 }
  0x30   :  { %v882_v49 = vld [vmem:[#allocation10 + $0x30] sm:$0xff]  ;;  %v881_v51 = vld [vmem:[#allocation10 + $0x28] sm:$0xff]  ;;  %v888_v52 = vld [vmem:[#allocation10 + $0x60] sm:$0xff] }
  0x31   :  { %402 = vmatpush.bf16.msrb.mxu0 %v679_v10  ;;  %377 = vmatpush.bf16.msra.mxu2 %v667_v16  ;;  %v880_v53 = vld [vmem:[#allocation10 + $0x20] sm:$0xff]  ;;  %v887_v54 = vld [vmem:[#allocation10 + $0x58] sm:$0xff]  ;;  %v114_v55 = vld [vmem:[%s1156_s3] sm:$0x3] }
  0x32   :  { %415 = vmatpush.bf16.msrb.mxu1 %v743_v13  ;;  %390 = vmatpush.bf16.msra.mxu3 %v731_v19  ;;  %v886_v56 = vld [vmem:[#allocation10 + $0x50] sm:$0xff]  ;;  %v116_v57 = vperm.slane %v114_v55, 0  ;;  %v117_v58 = vperm.slane %v114_v55, 1  ;;  %v879_v5 = vld [vmem:[#allocation10 + $0x18] sm:$0xff]  ;;  %v885_v6 = vld [vmem:[#allocation10 + $0x48] sm:$0xff] }
  0x33   :  { %v878_v7 = vld [vmem:[#allocation10 + $0x10] sm:$0xff]  ;;  %v884_v8 = vld [vmem:[#allocation10 + $0x40] sm:$0xff]  ;;  %v877_v9 = vld [vmem:[#allocation10 + $0x8] sm:$0xff] }
  0x34   :  { %v876_v10 = vld [vmem:[#allocation10] sm:$0xff]  ;;  %v206_v11 = vld [vmem:[%s1158_s5] sm:$0x3] }
  0x35   :  { %403 = vmatpush.bf16.msrb.mxu0 %v671_v20  ;;  %378 = vmatpush.bf16.msra.mxu2 %v659_v25  ;;  %v209_v12 = vperm.slane %v206_v11, 1  ;;  %v208_v17 = vperm.slane %v206_v11, 0  ;;  %v904_v32 = vld [vmem:[%s1160_s7] ss:$0 sm:$0xff]  ;;  %s1068_s7 = smov [#allocation11]  }
  0x36   :  { %416 = vmatpush.bf16.msrb.mxu1 %v735_v21  ;;  %391 = vmatpush.bf16.msra.mxu3 %v723_v29  ;;  %v905_v40 = vld [vmem:[%s1161_s8] ss:$0 sm:$0xff]  ;;  %s616_s18 = sshll.u32 %s1068_s7, 4  ;;  %s617_s18 = int_to_ptr.vmem [resolvable:$true] %s616_s18 }
  0x39   :  { %404 = vmatpush.bf16.msrb.mxu0 %v663_v30  ;;  %379 = vmatpush.bf16.msra.mxu2 %v651_v37  ;;  %v1067_v30 = vmov 8   ;;  %v587_v37 = vld [vmem:[#allocation5] sm:$0xff] }
  0x3a   :  { %417 = vmatpush.bf16.msrb.mxu1 %v727_v33  ;;  %392 = vmatpush.bf16.msra.mxu3 %v715_v41 }
  0x3b   :  { %903 = vset.pattern.permute.xlu0 %v1067_v30 }
  0x3d   :  { %405 = vmatpush.bf16.msrb.mxu0 %v655_v42  ;;  %560 = vmatpush.bf16.msrb.mxu2 %v883_v47 }
  0x3e   :  { %418 = vmatpush.bf16.msrb.mxu1 %v719_v45  ;;  %573 = vmatpush.bf16.msrb.mxu3 %v891_v46  ;;  %v599_v45 = vlaneseq }
  0x40   :  { %v600_v47 = vand.u32 127, %v599_v45 }
  0x41   :  { %561 = vmatpush.bf16.msrb.mxu2 %v882_v49 }
  0x42   :  { %574 = vmatpush.bf16.msrb.mxu3 %v890_v48  ;;  %vm602_vm2 = vcmp.eq.s32.totalorder %v600_v47, 1  ;;  %vm601_vm3 = vcmp.eq.s32.totalorder %v600_v47, 0 }
  0x45   :  { %562 = vmatpush.bf16.msrb.mxu2 %v881_v51 }
  0x46   :  { %575 = vmatpush.bf16.msrb.mxu3 %v889_v50 }
  0x49   :  { %563 = vmatpush.bf16.msrb.mxu2 %v880_v53 }
  0x4a   :  { %576 = vmatpush.bf16.msrb.mxu3 %v888_v52 }
  0x4d   :  { %564 = vmatpush.bf16.msrb.mxu2 %v879_v5 }
  0x4e   :  { %577 = vmatpush.bf16.msrb.mxu3 %v887_v54 }
  0x51   :  { %565 = vmatpush.bf16.msrb.mxu2 %v878_v7 }
  0x52   :  { %578 = vmatpush.bf16.msrb.mxu3 %v886_v56 }
  0x55   :  { %566 = vmatpush.bf16.msrb.mxu2 %v877_v9 }
  0x56   :  { %579 = vmatpush.bf16.msrb.mxu3 %v885_v6 }
  0x59   :  { %567 = vmatpush.bf16.msrb.mxu2 %v876_v10 }
  0x5a   :  { %580 = vmatpush.bf16.msrb.mxu3 %v884_v8 }
  0x9d   :  { %v153_v59 = vpop.f32.mrf.mxu0 }
  0x9e   :  { %v154_v60 = vadd.f32 %v153_v59, %v116_v57 }
  0xa0   :  { %v166_v61 = vpop.f32.mrf.mxu1  ;;  %v170_v63 = vmax.f32 %v154_v60, 0.0 }
  0xa1   :  { %v167_v62 = vadd.f32 %v166_v61, %v117_v58 }
  0xa2   :  { %v172_v1 = vpack.c.bf16 %v170_v63, %v170_v63 }
  0xa3   :  { %v171_v0 = vmax.f32 %v167_v62, 0.0 }
  0xa4   :  { %380 = vmatmul.bf16.vlgmr.msra.gmra.mxu2 %v172_v1  ;;  %406 = vmatmul.bf16.vlgmr.msrb.gmra.mxu0 %v172_v1 }
  0xa5   :  { %v173_v2 = vpack.c.bf16 %v171_v0, %v171_v0  ;;  %v155_v3 = vpop.f32.mrf.mxu0 }
  0xa7   :  { %393 = vmatmul.bf16.vlgmr.msra.gmra.mxu3 %v173_v2  ;;  %419 = vmatmul.bf16.vlgmr.msrb.gmra.mxu1 %v173_v2 }
  0xa8   :  { %v168_v4 = vpop.f32.mrf.mxu1 }
 0x121   :  { %v407_v13 = vpop.f32.mrf.mxu0 }
 0x122   :  { %v408_v14 = vadd.f32 %v407_v13, %v209_v12 }
 0x124   :  { %v420_v15 = vpop.f32.mrf.mxu1 }
 0x125   :  { %v421_v16 = vadd.f32 %v420_v15, %v408_v14 }
 0x127   :  { %v425_v18 = vmax.f32 %v421_v16, 0.0  ;;  %v381_v19 = vpop.f32.mrf.mxu2 }
 0x128   :  { %v382_v21 = vadd.f32 %v381_v19, %v208_v17 }
 0x129   :  { %v427_v20 = vpack.c.bf16 %v425_v18, %v425_v18  ;;  %v409_v23 = vpop.f32.mrf.mxu0 }
 0x12a   :  { %v394_v22 = vpop.f32.mrf.mxu3 }
 0x12b   :  { %v395_v24 = vadd.f32 %v394_v22, %v382_v21  ;;  %581 = vmatmul.bf16.vlgmr.msrb.gmra.mxu3 %v427_v20 }
 0x12c   :  { %v422_v25 = vpop.f32.mrf.mxu1 }
 0x12d   :  { %v424_v26 = vmax.f32 %v395_v24, 0.0 }
 0x12f   :  { %v426_v27 = vpack.c.bf16 %v424_v26, %v424_v26  ;;  %v383_v28 = vpop.f32.mrf.mxu2 }
 0x131   :  { %568 = vmatmul.bf16.vlgmr.msrb.gmra.mxu2 %v426_v27 }
 0x132   :  { %v396_v29 = vpop.f32.mrf.mxu3 }
 0x1ae   :  { %v582_v31 = vpop.f32.mrf.mxu3 }
 0x1b4   :  { %v569_v33 = vpop.f32.mrf.mxu2 }
 0x1b5   :  { %v570_v34 = vadd.f32 %v904_v32, %v569_v33 }
 0x1b6   :  { %v584_v35 = vpop.f32.mrf.mxu3 }
 0x1b7   :  { %v583_v36 = vadd.f32 %v582_v31, %v570_v34 }
 0x1b9   :  { %v586_v38 = vmax.f32 %v583_v36, 0.0 }
 0x1bb   :  { %v588_v39 = vsub.f32 %v587_v37, %v586_v38 }
 0x1bc   :  { %v571_v41 = vpop.f32.mrf.mxu2 }
 0x1bd   :  { %v589_v42 = vmul.f32 %v588_v39, %v588_v39 }
 0x1bf   :  { %v594_v43 = vmul.f32 %v905_v40, %v589_v42 }
 0x1c1   :  { %v596_v44 = vsel %vm595_vm1, %v594_v43, 0.0 }
 0x1c2   :  { %597 = vadd.xlane.f32.xlu0 %v596_v44 }
 0x1d6   :  { %605 = vperm.xlu0 %903, %v583_v36  }
 0x235   :  { %v598_v46 = vpop.xlane.xlu0 %597 }
 0x248   :  { %v606_v48 = vpop.permute.xlu0 %605 }
 0x249   :  { %v608_v49 = vsel %vm602_vm2, %v606_v48, 0.0 }
 0x24a   :  { %v609_v50 = vsel %vm601_vm3, %v598_v46, %v608_v49 }
 0x24b   :  { %610 = vst.msk [vmem:[#allocation11] sm:$0xff] %vm595_vm1, %v609_v50 }
 0x24c   :  { %621 = dma.vmem_to_hbm [thread:$0]  %s617_s18, 128, %s619_s21, [#allocation4]  }
 0x24d   :  { %1056 = dma.done.wait [#allocation4], 128  }
 0x24e   :  { %1057 = vsyncadd [#allocation4], 4294967168 }
 0x24f   :  { %626 = vsyncpa [#allocation3], 1 }
 0x250   :  { %627 = vsyncpa [#allocation6], 1 }
 0x251   :  { %628 = vsyncpa [#allocation9], 1 }
 0x252   :  { %629 = vsyncpa [#allocation4], 1 }

</bundles_post_ra>
